<compile_context>
chip_gen: v7x
topology: tpu7x:2x2x1
jax: 0.10.0
libtpu: 0.0.40
codegen_flags: <defaults>
</compile_context>

<pallas_src>
import functools

import numpy as np
import jax
import jax.numpy as jnp
from jax.experimental import pallas as pl
from jax.experimental.pallas import tpu as pltpu


_VMEM_LIMIT = 32 * 1024 * 1024  # fits v5e/v6e/v7x scoped budgets with headroom


def _cparams(semantics):
    return pltpu.CompilerParams(dimension_semantics=semantics,
                                vmem_limit_bytes=_VMEM_LIMIT)


def _round_up(x, m):
    return ((x + m - 1) // m) * m


def _tile(dim, align, cap):
    """(tile, padded_dim): full-dim block (no padding) when dim <= cap,
    otherwise an `align`-aligned cap-sized tile with minimal padding."""
    if dim <= cap:
        return dim, dim
    return cap, _round_up(dim, cap)


# ----------------------------------------------------------------------------
# Pallas kernels
# ----------------------------------------------------------------------------
def _matmul_kernel(a_ref, b_ref, bias_ref, o_ref, acc_ref, *, activation):
    """Tiled matmul with K-accumulation and fused bias + activation epilogue."""
    @pl.when(pl.program_id(2) == 0)
    def _():
        acc_ref[...] = jnp.zeros_like(acc_ref)

    acc_ref[...] += jnp.dot(a_ref[...], b_ref[...],
                            preferred_element_type=jnp.float32)

    @pl.when(pl.program_id(2) == pl.num_programs(2) - 1)
    def _():
        r = acc_ref[...] + bias_ref[...]
        if activation == "relu":
            r = jnp.maximum(r, 0.0)
        elif activation == "sigmoid":
            r = jax.nn.sigmoid(r)
        o_ref[...] = r.astype(o_ref.dtype)


def _sum_relu_kernel(*refs):
    """out = relu(sum(inputs)); refs = (*inputs, out)."""
    o_ref = refs[-1]
    acc = refs[0][...]
    for r in refs[1:-1]:
        acc = acc + r[...]
    o_ref[...] = jnp.maximum(acc, 0.0)


def _conv3x3_kernel(x_hbm, w_ref, bias_ref, o_ref, xbuf, sem, *, th, wp, hp):
    """3x3 'same' conv over one (batch, row-block) tile.

    The spatially padded input is flattened to (B*(H+2)*(W+2), C) rows in HBM.
    A (th+2)-row window is DMA'd into VMEM and the 9 taps become 9 shifted 2D
    matmuls accumulated into the (padded-width) output block.  Columns >= W of
    the output are wrap-around junk and are sliced off in the wrapper.
    """
    b = pl.program_id(0)
    i = pl.program_id(1)
    rows = th * wp
    base = (b * hp + i * th) * wp
    cp = pltpu.make_async_copy(x_hbm.at[pl.ds(base, xbuf.shape[0])], xbuf,
                               sem.at[0])
    cp.start()
    cp.wait()

    o_ref[...] = jnp.broadcast_to(bias_ref[...], o_ref.shape)
    for dy in range(3):
        for dx in range(3):
            off = dy * wp + dx
            a = xbuf[pl.ds(off, rows), :]
            o_ref[...] += jnp.dot(a, w_ref[dy * 3 + dx],
                                  preferred_element_type=jnp.float32)


def _bn_stats_kernel(x_ref, o_ref):
    """Accumulate per-column [sum; sum of squares] over all row-blocks."""
    @pl.when(pl.program_id(0) == 0)
    def _():
        o_ref[...] = jnp.zeros_like(o_ref)
    x = x_ref[...]
    s = jnp.sum(x, axis=0, keepdims=True)
    q = jnp.sum(x * x, axis=0, keepdims=True)
    o_ref[...] += jnp.concatenate([s, q], axis=0)


def _bn_apply_kernel(x_ref, scale_ref, shift_ref, alpha_ref, o_ref):
    """y = x*scale + shift ; PReLU(shared alpha)."""
    y = x_ref[...] * scale_ref[...] + shift_ref[...]
    a = alpha_ref[0, 0]
    o_ref[...] = jnp.where(y >= 0.0, y, a * y)


# ----------------------------------------------------------------------------
# Pallas wrappers
# ----------------------------------------------------------------------------
def pallas_matmul(a, b, bias=None, activation="none",
                  cap_m=512, cap_n=512, cap_k=1024):
    """out = act(a @ b + bias) with shape-adaptive tiles (no padding of small dims)."""
    a = jnp.asarray(a, jnp.float32)
    b = jnp.asarray(b, jnp.float32)
    M, K = a.shape
    K2, N = b.shape
    assert K == K2
    tm, Mp = _tile(M, 8, cap_m)
    tn, Np = _tile(N, 128, cap_n)
    tk, Kp = _tile(K, 128, cap_k)

    a_p = a if (Mp == M and Kp == K) else jnp.pad(a, ((0, Mp - M), (0, Kp - K)))
    b_p = b if (Kp == K and Np == N) else jnp.pad(b, ((0, Kp - K), (0, Np - N)))
    if bias is None:
        bias_p = jnp.zeros((1, Np), jnp.float32)
    else:
        bias_p = jnp.asarray(bias, jnp.float32).reshape(1, N)
        if Np != N:
            bias_p = jnp.pad(bias_p, ((0, 0), (0, Np - N)))

    grid = (Mp // tm, Np // tn, Kp // tk)
    out = pl.pallas_call(
        functools.partial(_matmul_kernel, activation=activation),
        out_shape=jax.ShapeDtypeStruct((Mp, Np), jnp.float32),
        grid_spec=pltpu.PrefetchScalarGridSpec(
            num_scalar_prefetch=0,
            grid=grid,
            in_specs=[
                pl.BlockSpec((tm, tk), lambda i, j, k: (i, k)),
                pl.BlockSpec((tk, tn), lambda i, j, k: (k, j)),
                pl.BlockSpec((1, tn), lambda i, j, k: (0, j)),
            ],
            out_specs=pl.BlockSpec((tm, tn), lambda i, j, k: (i, j)),
            scratch_shapes=[pltpu.VMEM((tm, tn), jnp.float32)],
        ),
        compiler_params=_cparams(("parallel", "parallel", "arbitrary")),
    )(a_p, b_p, bias_p)
    if Mp != M or Np != N:
        out = out[:M, :N]
    return out


def pallas_sum_relu(parts):
    """relu(sum(parts)); parts are 2D arrays of identical shape."""
    M, N = parts[0].shape
    tm, Mp = _tile(M, 8, 512)
    tn, Np = _tile(N, 128, 512)
    if Mp != M or Np != N:
        parts = [jnp.pad(t, ((0, Mp - M), (0, Np - N))) for t in parts]
    grid = (Mp // tm, Np // tn)
    out = pl.pallas_call(
        _sum_relu_kernel,
        out_shape=jax.ShapeDtypeStruct((Mp, Np), jnp.float32),
        grid_spec=pltpu.PrefetchScalarGridSpec(
            num_scalar_prefetch=0,
            grid=grid,
            in_specs=[pl.BlockSpec((tm, tn), lambda i, j: (i, j))
                      for _ in parts],
            out_specs=pl.BlockSpec((tm, tn), lambda i, j: (i, j)),
        ),
        compiler_params=_cparams(("parallel", "parallel")),
    )(*parts)
    if Mp != M or Np != N:
        out = out[:M, :N]
    return out


def _choose_row_block(H, Wp, C, Cout, budget=4 * 1024 * 1024):
    """Largest divisor of H whose DMA window + output block fit the VMEM budget
    and whose flattened output block is sublane(8)-aligned."""
    aligned = [th for th in range(H, 0, -1)
               if H % th == 0 and (th * Wp) % 8 == 0]
    if not aligned:
        return H
    for th in aligned:
        need = ((th + 2) * Wp + 8) * C * 4 + 3 * (th * Wp) * Cout * 4
        if need <= budget:
            return th
    return aligned[-1]


def conv3x3_same(x, w9, bias):
    """3x3 'same' conv (stride 1, pad 1), NHWC; w9 is (9, Cin, Cout), taps in
    (dy, dx) row-major order.  No im2col buffer: row-windows are DMA'd manually."""
    B, H, W, C = x.shape
    Cout = w9.shape[-1]
    Hp, Wp = H + 2, W + 2
    xp = jnp.pad(x, ((0, 0), (1, 1), (1, 1), (0, 0)))
    xflat = jnp.pad(xp.reshape(B * Hp * Wp, C), ((0, 8), (0, 0)))

    th = _choose_row_block(H, Wp, C, Cout)
    n_h = H // th
    L = (th + 2) * Wp + 8

    out = pl.pallas_call(
        functools.partial(_conv3x3_kernel, th=th, wp=Wp, hp=Hp),
        out_shape=jax.ShapeDtypeStruct((B * H * Wp, Cout), jnp.float32),
        grid_spec=pltpu.PrefetchScalarGridSpec(
            num_scalar_prefetch=0,
            grid=(B, n_h),
            in_specs=[
                pl.BlockSpec(memory_space=pl.ANY),                   # padded input (manual DMA)
                pl.BlockSpec((9, C, Cout), lambda b, i: (0, 0, 0)),  # weights
                pl.BlockSpec((1, Cout), lambda b, i: (0, 0)),        # bias
            ],
            out_specs=pl.BlockSpec((th * Wp, Cout),
                                   lambda b, i: (b * n_h + i, 0)),
            scratch_shapes=[pltpu.VMEM((L, C), jnp.float32),
                            pltpu.SemaphoreType.DMA((1,))],
        ),
        compiler_params=_cparams(("parallel", "arbitrary")),
    )(xflat, jnp.asarray(w9, jnp.float32),
      jnp.asarray(bias, jnp.float32).reshape(1, Cout))
    # drop the 2 wrap-around (padded-width) columns
    return out.reshape(B, H, Wp, Cout)[:, :, :W, :]


def pallas_bn_prelu(x2d, gamma, beta, alpha, eps=1e-5):
    """BatchNorm2d (train-mode batch stats, matching nn.Module default train())
    + PReLU (shared alpha), tiled in two passes over (M, C) = (B*H*W, C)."""
    M, C = x2d.shape
    if C < 128 and 128 % C == 0 and (M * C) % 128 == 0:
        rep = 128 // C                       # lane-dense regroup
        xw = x2d.reshape(M // rep, 128)
    else:
        rep = 1
        xw = x2d
    Mw, Wc = xw.shape
    tm, Mp = _tile(Mw, 8, 1024)
    xw_p = xw if Mp == Mw else jnp.pad(xw, ((0, Mp - Mw), (0, 0)))
    grid = (Mp // tm,)

    # pass 1: per-column sum / sum-of-squares
    stats = pl.pallas_call(
        _bn_stats_kernel,
        out_shape=jax.ShapeDtypeStruct((2, Wc), jnp.float32),
        grid_spec=pltpu.PrefetchScalarGridSpec(
            num_scalar_prefetch=0,
            grid=grid,
            in_specs=[pl.BlockSpec((tm, Wc), lambda i: (i, 0))],
            out_specs=pl.BlockSpec((2, Wc), lambda i: (0, 0)),
        ),
        compiler_params=_cparams(("arbitrary",)),
    )(xw_p)

    # tiny per-channel math outside the kernel (column j -> channel j % C)
    s = stats[0].reshape(rep, C).sum(axis=0)
    q = stats[1].reshape(rep, C).sum(axis=0)
    mean = s / M
    var = jnp.maximum(q / M - mean * mean, 0.0)
    scale = jnp.asarray(gamma, jnp.float32) * jax.lax.rsqrt(var + eps)
    shift = jnp.asarray(beta, jnp.float32) - mean * scale
    scale_w = jnp.tile(scale, rep).reshape(1, Wc)
    shift_w = jnp.tile(shift, rep).reshape(1, Wc)
    alpha_w = jnp.asarray(alpha, jnp.float32).reshape(1, 1)

    # pass 2: normalise + PReLU
    y = pl.pallas_call(
        _bn_apply_kernel,
        out_shape=jax.ShapeDtypeStruct((Mp, Wc), jnp.float32),
        grid_spec=pltpu.PrefetchScalarGridSpec(
            num_scalar_prefetch=0,
            grid=grid,
            in_specs=[pl.BlockSpec((tm, Wc), lambda i: (i, 0)),
                      pl.BlockSpec((1, Wc), lambda i: (0, 0)),
                      pl.BlockSpec((1, Wc), lambda i: (0, 0)),
                      pl.BlockSpec((1, 1), lambda i: (0, 0))],
            out_specs=pl.BlockSpec((tm, Wc), lambda i: (i, 0)),
        ),
        compiler_params=_cparams(("parallel",)),
    )(xw_p, scale_w, shift_w, alpha_w)
    if Mp != Mw:
        y = y[:Mw]
    return y.reshape(M, C)


# ----------------------------------------------------------------------------
# Resampling matrices (built host-side; applied with the Pallas matmul kernel)
# ----------------------------------------------------------------------------
def adaptive_pool_matrix(out_size, in_size):
    """Row-averaging matrix matching nn.AdaptiveAvgPool2d bucketing."""
    P = np.zeros((out_size, in_size), np.float32)
    for i in range(out_size):
        start = (i * in_size) // out_size
        end = -(-((i + 1) * in_size) // out_size)  # ceil
        P[i, start:end] = 1.0 / (end - start)
    return jnp.asarray(P)


def bilinear_matrix(out_size, in_size):
    """Interpolation matrix matching F.upsample(mode='bilinear') with the
    modern PyTorch default align_corners=False."""
    W = np.zeros((out_size, in_size), np.float32)
    if in_size == 1:
        W[:, 0] = 1.0
        return jnp.asarray(W)
    scale = in_size / out_size
    for i in range(out_size):
        src = max((i + 0.5) * scale - 0.5, 0.0)
        i0 = min(int(np.floor(src)), in_size - 1)
        i1 = min(i0 + 1, in_size - 1)
        lam = src - i0
        W[i, i0] += 1.0 - lam
        W[i, i1] += lam
    return jnp.asarray(W)


def spatial_rows(A, x):
    """einsum('oh,bhwc->bowc') via the Pallas matmul kernel."""
    B, h, w, C = x.shape
    O = A.shape[0]
    xm = jnp.transpose(x, (1, 0, 2, 3)).reshape(h, B * w * C)
    y = pallas_matmul(A, xm)
    return jnp.transpose(y.reshape(O, B, w, C), (1, 0, 2, 3))


def spatial_cols(A, x):
    """einsum('ow,bhwc->bhoc') via the Pallas matmul kernel."""
    B, h, w, C = x.shape
    O = A.shape[0]
    xm = jnp.transpose(x, (2, 0, 1, 3)).reshape(w, B * h * C)
    y = pallas_matmul(A, xm)
    return jnp.transpose(y.reshape(O, B, h, C), (1, 2, 0, 3))


def conv1x1(x, w, b=None, activation="none"):
    B, H, W, C = x.shape
    y = pallas_matmul(x.reshape(B * H * W, C), w, b, activation)
    return y.reshape(B, H, W, w.shape[1])


# ----------------------------------------------------------------------------
# PSPNet
# ----------------------------------------------------------------------------
class PSPNetPallas:
    def __init__(self, key, n_classes=1, sizes=(1, 2, 3, 6), psp_size=768,
                 psp_out=1024, up_channels=(256, 64, 64)):
        self.sizes = sizes
        self.psp_size = psp_size
        keys = iter(jax.random.split(key, 32))

        def rnd(shape):
            return jax.random.normal(next(keys), shape, jnp.float32) * 0.05

        # PSPModule: per-size 1x1 conv (bias=False) + bottleneck 1x1 conv
        self.stage_w = [rnd((psp_size, psp_size)) for _ in sizes]
        cat_c = psp_size * (len(sizes) + 1)
        self.bottle_w = rnd((cat_c, psp_out))
        self.bottle_b = rnd((psp_out,))

        # PSPUpsample blocks: 3x3 conv (taps stored as (9, in, out)) + BN + PReLU
        self.up_params = []
        in_c = psp_out
        for out_c in up_channels:
            w = rnd((9, in_c, out_c))
            b = rnd((out_c,))
            gamma = jnp.ones((out_c,), jnp.float32)   # BatchNorm2d default init
            beta = jnp.zeros((out_c,), jnp.float32)
            alpha = jnp.float32(0.25)                 # nn.PReLU() default init
            self.up_params.append((w, b, gamma, beta, alpha))
            in_c = out_c

        # final: 1x1 conv + sigmoid
        self.final_w = rnd((in_c, n_classes))
        self.final_b = rnd((n_classes,))

    def __call__(self, f_nchw):
        # f_nchw: backbone feature map, NCHW -> NHWC
        x = jnp.transpose(jnp.asarray(f_nchw, jnp.float32), (0, 2, 3, 1))
        B, H, W, C = x.shape
        P = self.bottle_w.shape[1]
        csz = self.psp_size
        n_br = len(self.sizes)

        # ---- PSPModule (bottleneck commuted through the linear upsample) ----
        # identity path gets the bottleneck bias
        w_main = self.bottle_w[n_br * csz:(n_br + 1) * csz]
        parts = [pallas_matmul(x.reshape(B * H * W, C), w_main, self.bottle_b)]
        for idx, (s, w_stage) in enumerate(zip(self.sizes, self.stage_w)):
            Ph, Pw = adaptive_pool_matrix(s, H), adaptive_pool_matrix(s, W)
            p = spatial_cols(Pw, spatial_rows(Ph, x))            # adaptive avg pool
            p = pallas_matmul(p.reshape(B * s * s, C), w_stage)  # stage 1x1 (no bias)
            w_slice = self.bottle_w[idx * csz:(idx + 1) * csz]
            p = pallas_matmul(p, w_slice)                        # bottleneck slice
            p = p.reshape(B, s, s, P)
            Uh, Uw = bilinear_matrix(H, s), bilinear_matrix(W, s)
            p = spatial_cols(Uw, spatial_rows(Uh, p))            # bilinear upsample
            parts.append(p.reshape(B * H * W, P))
        p = pallas_sum_relu(parts).reshape(B, H, W, P)

        # ---- PSPUpsample x3 ----
        for (w9, bcv, gamma, beta, alpha) in self.up_params:
            h, wd = p.shape[1], p.shape[2]
            Uh, Uw = bilinear_matrix(2 * h, h), bilinear_matrix(2 * wd, wd)
            p = spatial_cols(Uw, spatial_rows(Uh, p))            # 2x bilinear upsample
            p = conv3x3_same(p, w9, bcv)                         # conv 3x3 pad=1
            Bc, Hc, Wc, Cc = p.shape
            p = pallas_bn_prelu(p.reshape(Bc * Hc * Wc, Cc),
                                gamma, beta, alpha).reshape(Bc, Hc, Wc, Cc)

        # ---- final head ----
        out = conv1x1(p, self.final_w, self.final_b, activation="sigmoid")
        return jnp.transpose(out, (0, 3, 1, 2))                  # back to NCHW


if __name__ == "__main__":
    key = jax.random.PRNGKey(0)
    k_param, k_x = jax.random.split(key)

    # Small, module-consistent shapes: batch=2, psp_size=64 feature channels,
    # 8x8 feature map; scaled-down decoder channels (defaults match the module).
    model = PSPNetPallas(k_param, n_classes=1, sizes=(1, 2, 3, 6),
                         psp_size=64, psp_out=128, up_channels=(32, 16, 16))

    x = jax.random.normal(k_x, (2, 64, 8, 8), jnp.float32)       # NCHW feature map
    out = model(x)
    out = jax.block_until_ready(out)

    assert out.shape == (2, 1, 64, 64), out.shape
    assert bool(jnp.all(jnp.isfinite(out)))
    assert bool(jnp.all((out >= 0.0) & (out <= 1.0)))            # sigmoid output
    print("KERNEL_OK")
</pallas_src>

<mosaic_0001>
module attributes {stable_mosaic.version = 11 : i64} {
  func.func @_matmul_kernel(%arg0: i32, %arg1: i32, %arg2: i32, %arg3: memref<128x64xf32, #tpu.memory_space<vmem>>, %arg4: memref<64x128xf32, #tpu.memory_space<vmem>>, %arg5: memref<1x128xf32, #tpu.memory_space<vmem>>, %arg6: memref<128x128xf32, #tpu.memory_space<vmem>>, %arg7: memref<128x128xf32, #tpu.memory_space<vmem>>) attributes {dimension_semantics = [#tpu.dimension_semantics<parallel>, #tpu.dimension_semantics<parallel>, #tpu.dimension_semantics<arbitrary>], iteration_bounds = array<i64: 1, 1, 1>, scalar_prefetch = 0 : i64, scratch_operands = 1 : i64, tpu.core_type = #tpu.core_type<tc>, window_params = [{transform_indices = @transform_0, window_bounds = array<i64: 128, 64>}, {transform_indices = @transform_1, window_bounds = array<i64: 64, 128>}, {transform_indices = @transform_2, window_bounds = array<i64: 1, 128>}, {transform_indices = @transform_3, window_bounds = array<i64: 128, 128>}]} {
    %c0_i32 = arith.constant 0 : i32
    %0 = arith.cmpi eq, %arg2, %c0_i32 : i32
    %1 = arith.extui %0 : i1 to i32
    %c0_i32_0 = arith.constant 0 : i32
    %2 = arith.cmpi ne, %1, %c0_i32_0 : i32
    scf.if %2 {
      %cst_10 = arith.constant 0.000000e+00 : f32
      %12 = vector.broadcast %cst_10 : f32 to vector<128x128xf32>
      %c0_11 = arith.constant 0 : index
      %c0_12 = arith.constant 0 : index
      %13 = vector.load %arg7[%c0_11, %c0_12] : memref<128x128xf32, #tpu.memory_space<vmem>>, vector<128x128xf32>
      tpu.vector_store %arg7[%c0_11, %c0_12], %12 {strides = array<i32>} : memref<128x128xf32, #tpu.memory_space<vmem>>, vector<128x128xf32>,
    } else {
    }
    %c0 = arith.constant 0 : index
    %c0_1 = arith.constant 0 : index
    %3 = vector.load %arg7[%c0, %c0_1] : memref<128x128xf32, #tpu.memory_space<vmem>>, vector<128x128xf32>
    %c0_2 = arith.constant 0 : index
    %c0_3 = arith.constant 0 : index
    %4 = vector.load %arg3[%c0_2, %c0_3] : memref<128x64xf32, #tpu.memory_space<vmem>>, vector<128x64xf32>
    %c0_4 = arith.constant 0 : index
    %c0_5 = arith.constant 0 : index
    %5 = vector.load %arg4[%c0_4, %c0_5] : memref<64x128xf32, #tpu.memory_space<vmem>>, vector<64x128xf32>
    %cst = arith.constant dense<0.000000e+00> : vector<128x128xf32>
    %6 = tpu.matmul %4, %5, %cst {dimension_numbers = #tpu.dot_dimension_numbers<[1], [0], [0], [1], [0, 0, 1, 1], [], []>} : vector<128x64xf32>, vector<64x128xf32>, vector<128x128xf32> -> vector<128x128xf32>
    %7 = arith.addf %3, %6 : vector<128x128xf32>
    %c0_6 = arith.constant 0 : index
    %c0_7 = arith.constant 0 : index
    %8 = vector.load %arg7[%c0_6, %c0_7] : memref<128x128xf32, #tpu.memory_space<vmem>>, vector<128x128xf32>
    tpu.vector_store %arg7[%c0_6, %c0_7], %7 {strides = array<i32>} : memref<128x128xf32, #tpu.memory_space<vmem>>, vector<128x128xf32>,
    %c0_i32_8 = arith.constant 0 : i32
    %9 = arith.cmpi eq, %arg2, %c0_i32_8 : i32
    %10 = arith.extui %9 : i1 to i32
    %c0_i32_9 = arith.constant 0 : i32
    %11 = arith.cmpi ne, %10, %c0_i32_9 : i32
    scf.if %11 {
      %c0_10 = arith.constant 0 : index
      %c0_11 = arith.constant 0 : index
      %12 = vector.load %arg7[%c0_10, %c0_11] : memref<128x128xf32, #tpu.memory_space<vmem>>, vector<128x128xf32>
      %c0_12 = arith.constant 0 : index
      %c0_13 = arith.constant 0 : index
      %13 = vector.load %arg5[%c0_12, %c0_13] : memref<1x128xf32, #tpu.memory_space<vmem>>, vector<1x128xf32>
      %14 = vector.broadcast %13 : vector<1x128xf32> to vector<128x128xf32>
      %15 = arith.addf %12, %14 : vector<128x128xf32>
      %c0_14 = arith.constant 0 : index
      %c0_15 = arith.constant 0 : index
      %16 = vector.load %arg6[%c0_14, %c0_15] : memref<128x128xf32, #tpu.memory_space<vmem>>, vector<128x128xf32>
      tpu.vector_store %arg6[%c0_14, %c0_15], %15 {strides = array<i32>} : memref<128x128xf32, #tpu.memory_space<vmem>>, vector<128x128xf32>,
    } else {
    }
    return
  }
  func.func @transform_0(%arg0: i32, %arg1: i32, %arg2: i32) -> (i32, i32) {
    %c0_i32 = arith.constant 0 : i32
    return %arg0, %arg2 : i32, i32
  }
  func.func @transform_1(%arg0: i32, %arg1: i32, %arg2: i32) -> (i32, i32) {
    %c0_i32 = arith.constant 0 : i32
    return %arg2, %arg1 : i32, i32
  }
  func.func @transform_2(%arg0: i32, %arg1: i32, %arg2: i32) -> (i32, i32) {
    %c0_i32 = arith.constant 0 : i32
    %c0_i32_0 = arith.constant 0 : i32
    return %c0_i32, %arg1 : i32, i32
  }
  func.func @transform_3(%arg0: i32, %arg1: i32, %arg2: i32) -> (i32, i32) {
    %c0_i32 = arith.constant 0 : i32
    return %arg0, %arg1 : i32, i32
  }
}

</mosaic_0001>

<bundles_post_ra>
// kernel: tpu_custom_call.1
= control target key start
LH: loop header
LB: loop body
LE: loop exit
PB: predicated region body
PF: predicated region fallthrough
CT: control target
= control target key end

     0   :  { %vm75_vm0 = vcmask 523264   ;;  %s633_s0 = inlined_call_operand.vmem [shape: f32[128,64], index: 0, kind: input, shape index: {}]   ;;  %s634_s1 = inlined_call_operand.vmem [shape: f32[64,128], index: 1, kind: input, shape index: {}]   ;;  %s635_s2 = inlined_call_operand.vmem [shape: f32[1,128], index: 2, kind: input, shape index: {}]   ;;  %s636_s3 = inlined_call_operand.hbm [shape: f32[128,128], index: 3, kind: output, shape index: {}]  }
   0x1   :  { %v67_v0 = vld [vmem:[%s634_s1] sm:$0xff]  ;;  %v68_v1 = vld [vmem:[%s634_s1 + $0x8] sm:$0xff]  ;;  %v69_v2 = vld [vmem:[%s634_s1 + $0x10] sm:$0xff] }
   0x2   :  { %v456_v3 = vpack.c.bf16 %v68_v1, %v67_v0  ;;  %v70_v4 = vld [vmem:[%s634_s1 + $0x18] sm:$0xff]  ;;  %v71_v6 = vld [vmem:[%s634_s1 + $0x20] sm:$0xff]  ;;  %v72_v7 = vld [vmem:[%s634_s1 + $0x28] sm:$0xff] }
   0x3   :  { %v460_v5 = vpack.c.bf16 %v70_v4, %v69_v2  ;;  %v51_v8 = vld [vmem:[%s633_s0] sm:$0xff]  ;;  %v464_v10 = vpack.c.bf16 %v72_v7, %v71_v6  ;;  %v73_v11 = vld [vmem:[%s634_s1 + $0x30] sm:$0xff]  ;;  %v74_v12 = vld [vmem:[%s634_s1 + $0x38] sm:$0xff] }
   0x4   :  { %457 = vmatprep.subr.bf16.mxu0 %v456_v3  ;;  %472 = vmatprep.subr.bf16.mxu1 %v456_v3  ;;  %v59_v9 = vld [vmem:[%s633_s0 + $0x40] sm:$0xff] }
   0x5   :  { %459 = vmatpush3.bf16.msra.mxu0 %v456_v3  ;;  %476 = vmatpush3.bf16.msra.mxu1 %v456_v3 }
   0x6   :  { %461 = vmatprep.subr.bf16.mxu0 %v460_v5  ;;  %473 = vmatprep.subr.bf16.mxu1 %v460_v5 }
   0x7   :  { %432 = vmatprep.mubr.msk.f32.mxu0 %vm75_vm0, %v51_v8  ;;  %444 = vmatprep.mubr.msk.f32.mxu1 %vm75_vm0, %v59_v9 }
   0x9   :  { %463 = vmatpush3.bf16.msra.mxu0 %v460_v5  ;;  %477 = vmatpush3.bf16.msra.mxu1 %v460_v5 }
   0xa   :  { %8 = vsyncpa [#allocation4], 0  ;;  %465 = vmatprep.subr.bf16.mxu0 %v464_v10  ;;  %474 = vmatprep.subr.bf16.mxu1 %v464_v10  ;;  %v468_v13 = vpack.c.bf16 %v74_v12, %v73_v11  ;;  %v52_v14 = vld [vmem:[%s633_s0 + $0x8] sm:$0xff]  ;;  %v53_v16 = vld [vmem:[%s633_s0 + $0x10] sm:$0xff] }
   0xb   :  { %v60_v15 = vld [vmem:[%s633_s0 + $0x48] sm:$0xff]  ;;  %v61_v17 = vld [vmem:[%s633_s0 + $0x50] sm:$0xff]  ;;  %v54_v18 = vld [vmem:[%s633_s0 + $0x18] sm:$0xff] }
   0xc   :  { %v62_v19 = vld [vmem:[%s633_s0 + $0x58] sm:$0xff]  ;;  %v55_v20 = vld [vmem:[%s633_s0 + $0x20] sm:$0xff]  ;;  %v56_v22 = vld [vmem:[%s633_s0 + $0x28] sm:$0xff] }
   0xd   :  { %467 = vmatpush3.bf16.msra.mxu0 %v464_v10  ;;  %478 = vmatpush3.bf16.msra.mxu1 %v464_v10  ;;  %v63_v21 = vld [vmem:[%s633_s0 + $0x60] sm:$0xff]  ;;  %v64_v23 = vld [vmem:[%s633_s0 + $0x68] sm:$0xff]  ;;  %v57_v24 = vld [vmem:[%s633_s0 + $0x30] sm:$0xff] }
   0xe   :  { %469 = vmatprep.subr.bf16.mxu0 %v468_v13  ;;  %475 = vmatprep.subr.bf16.mxu1 %v468_v13  ;;  %v65_v25 = vld [vmem:[%s633_s0 + $0x70] sm:$0xff]  ;;  %v58_v26 = vld [vmem:[%s633_s0 + $0x38] sm:$0xff]  ;;  %v391_v28 = vld [vmem:[%s635_s2] ss:$0 sm:$0xff] }
   0xf   :  { %v66_v27 = vld [vmem:[%s633_s0 + $0x78] sm:$0xff]  ;;  %s507_s0 = smov [#allocation3]  }
  0x10   :  { %s364_s2 = sshll.u32 %s507_s0, 4  ;;  %s365_s2 = int_to_ptr.vmem [resolvable:$true] %s364_s2 }
  0x11   :  { %471 = vmatpush3.bf16.msra.mxu0 %v468_v13  ;;  %479 = vmatpush3.bf16.msra.mxu1 %v468_v13  ;;  %s483_s1 = scalar_lea.vmem %s365_s2, 2048  ;;  %p488_p1 = scmp.lt.s32.totalorder %s365_s2, %s365_s2 }
  0x12   :  { %p484_p0 = scmp.ne.s32.totalorder %s365_s2, %s483_s1  ;;  %p489_p2 = scmp.lt.s32.totalorder %s483_s1, %s483_s1 }
  0x14   :  { %433 = vmatmul.mubr.msk.f32.vlgmr.msra.gmra.mrb[0].mxu0 %vm75_vm0, %v52_v14  ;;  %445 = vmatmul.mubr.msk.f32.vlgmr.msra.gmra.mrb[0].mxu1 %vm75_vm0, %v60_v15  ;;  %p490_p3 = por %p489_p2, %p488_p1 }
  0x15   :  { %435 = vmatprep.mubr.msk.f32.mxu0 %vm75_vm0, %v53_v16  ;;  %447 = vmatprep.mubr.msk.f32.mxu1 %vm75_vm0, %v61_v17 }
  0x16   :  { %p491_p4 = pnand %p490_p3, %p484_p0 }
  0x18   :  { %436 = vmatmul.mubr.msk.f32.gmra.mrb[2].mxu0 %vm75_vm0, %v54_v18  ;;  %448 = vmatmul.mubr.msk.f32.gmra.mrb[2].mxu1 %vm75_vm0, %v62_v19 }
  0x19   :  { %438 = vmatprep.mubr.msk.f32.mxu0 %vm75_vm0, %v55_v20  ;;  %450 = vmatprep.mubr.msk.f32.mxu1 %vm75_vm0, %v63_v21 }
  0x1c   :  { %439 = vmatmul.mubr.msk.f32.gmra.mrb[4].mxu0 %vm75_vm0, %v56_v22  ;;  %451 = vmatmul.mubr.msk.f32.gmra.mrb[4].mxu1 %vm75_vm0, %v64_v23 }
  0x1d   :  { %441 = vmatprep.mubr.msk.f32.mxu0 %vm75_vm0, %v57_v24  ;;  %453 = vmatprep.mubr.msk.f32.mxu1 %vm75_vm0, %v65_v25 }
  0x20   :  { %442 = vmatmul.mubr.msk.f32.gmra.mrb[6].mxu0 %vm75_vm0, %v58_v26  ;;  %454 = vmatmul.mubr.msk.f32.gmra.mrb[6].mxu1 %vm75_vm0, %v66_v27 }
  0xe7   :  { %v434_v29 = vpop.f32.mrb[0].mxu0  ;;  %v446_v30 = vpop.f32.mrb[0].mxu1 }
  0xe8   :  { %v328_v31 = vadd.f32 %v434_v29, %v391_v28  ;;  %v336_v32 = vadd.f32 %v446_v30, %v391_v28  ;;  %v190_v33 = vpop.f32.mrb[1].mxu0  ;;  %v230_v34 = vpop.f32.mrb[1].mxu1 }
  0xe9   :  { %v327_v35 = vadd.f32 %v391_v28, %v190_v33  ;;  %v335_v36 = vadd.f32 %v391_v28, %v230_v34 }
  0xea   :  { %344 = vst [vmem:[#allocation3 + $0x8] sm:$0xff] %v328_v31  ;;  %352 = vst [vmem:[#allocation3 + $0x48] sm:$0xff] %v336_v32 }
  0xeb   :  { %343 = vst [vmem:[#allocation3] sm:$0xff] %v327_v35  ;;  %351 = vst [vmem:[#allocation3 + $0x40] sm:$0xff] %v335_v36  ;;  %v437_v37 = vpop.f32.mrb[2].mxu0  ;;  %v449_v38 = vpop.f32.mrb[2].mxu1 }
  0xec   :  { %v330_v39 = vadd.f32 %v437_v37, %v391_v28  ;;  %v338_v40 = vadd.f32 %v449_v38, %v391_v28  ;;  %v200_v41 = vpop.f32.mrb[3].mxu0  ;;  %v240_v42 = vpop.f32.mrb[3].mxu1 }
  0xed   :  { %v329_v43 = vadd.f32 %v391_v28, %v200_v41  ;;  %v337_v44 = vadd.f32 %v391_v28, %v240_v42 }
  0xee   :  { %346 = vst [vmem:[#allocation3 + $0x18] sm:$0xff] %v330_v39  ;;  %354 = vst [vmem:[#allocation3 + $0x58] sm:$0xff] %v338_v40 }
  0xef   :  { %345 = vst [vmem:[#allocation3 + $0x10] sm:$0xff] %v329_v43  ;;  %353 = vst [vmem:[#allocation3 + $0x50] sm:$0xff] %v337_v44  ;;  %v440_v45 = vpop.f32.mrb[4].mxu0  ;;  %v452_v46 = vpop.f32.mrb[4].mxu1 }
  0xf0   :  { %v332_v47 = vadd.f32 %v440_v45, %v391_v28  ;;  %v340_v48 = vadd.f32 %v452_v46, %v391_v28  ;;  %v210_v49 = vpop.f32.mrb[5].mxu0  ;;  %v250_v50 = vpop.f32.mrb[5].mxu1 }
  0xf1   :  { %v331_v51 = vadd.f32 %v391_v28, %v210_v49  ;;  %v339_v52 = vadd.f32 %v391_v28, %v250_v50 }
  0xf2   :  { %348 = vst [vmem:[#allocation3 + $0x28] sm:$0xff] %v332_v47  ;;  %356 = vst [vmem:[#allocation3 + $0x68] sm:$0xff] %v340_v48 }
  0xf3   :  { %347 = vst [vmem:[#allocation3 + $0x20] sm:$0xff] %v331_v51  ;;  %355 = vst [vmem:[#allocation3 + $0x60] sm:$0xff] %v339_v52  ;;  %v443_v53 = vpop.f32.mrb[6].mxu0  ;;  %v455_v54 = vpop.f32.mrb[6].mxu1 }
  0xf4   :  { %v334_v55 = vadd.f32 %v443_v53, %v391_v28  ;;  %v342_v56 = vadd.f32 %v455_v54, %v391_v28  ;;  %v220_v57 = vpop.f32.mrb[7].mxu0  ;;  %v260_v58 = vpop.f32.mrb[7].mxu1 }
  0xf5   :  { %v333_v59 = vadd.f32 %v391_v28, %v220_v57  ;;  %v341_v60 = vadd.f32 %v391_v28, %v260_v58 }
  0xf6   :  { %350 = vst [vmem:[#allocation3 + $0x38] sm:$0xff] %v334_v55  ;;  %358 = vst [vmem:[#allocation3 + $0x78] sm:$0xff] %v342_v56 }
  0xf7   :  { %349 = vst [vmem:[#allocation3 + $0x30] sm:$0xff] %v333_v59  ;;  %357 = vst [vmem:[#allocation3 + $0x70] sm:$0xff] %v341_v60 }
  0xf8   :  { %494 = shalt.err (!%p491_p4)
}
  0xf9   :  { %s495_s9 = scalar_lea.hbm %s636_s3, 2048 }
  0xfa   :  { %p496_p5 = scmp.ne.s32.totalorder %s636_s3, %s495_s9  ;;  %p499_p6 = scmp.lt.u32.totalorder %s495_s9, %s636_s3 }
  0xfc   :  { %p501_p7 = pnand %p499_p6, %p496_p5 }
  0xfe   :  { %504 = shalt.err (!%p501_p7)
}
  0xff   :  { %s508_s14 = smov 128   ;;  %s509_s15 = smov 8  }
 0x100   :  { %370 = dma.vmem_to_hbm [thread:$0]  %s365_s2, 2048, %s636_s3, [#allocation4], %s508_s14, %s508_s14, %s509_s15  }
 0x101   :  { %505 = dma.done.wait [#allocation4], 2048  }
 0x102   :  { %506 = vsyncadd [#allocation4], 4294965248 }
 0x103   :  { %374 = vsyncpa [#allocation4], 1 }

</bundles_post_ra>
